<compile_context>
chip_gen: v6e
topology: v6e:2x2x1
jax: 0.10.0
libtpu: 0.0.40
codegen_flags: <defaults>
</compile_context>

<pallas_src>
import functools

import jax
import jax.numpy as jnp
from jax.experimental import pallas as pl
from jax.experimental.pallas import tpu as pltpu

TK = 256                      # default reduction tile (kh*kw*Cin)
VMEM_LIMIT = 32 * 1024 * 1024  # explicit scoped-VMEM budget; block footprint stays << this
                               # (worst case ~11 MiB: tm=768, Np=1024, bf16 A/W, f32 acc).


def _cdiv(a, b):
    return (a + b - 1) // b


def _pick_tm(M):
    # Small feature maps: one M tile (weights streamed exactly once).
    if M <= 1024:
        return 256 * _cdiv(M, 256)
    return 512


def _pick_tk(K):
    return 128 if K <= 128 else TK


# ---------------------------------------------------------------------------
# Pallas kernels
# ---------------------------------------------------------------------------
def _fused_matmul_kernel(a_ref, w_ref, s_ref, b_ref, o_ref, acc_ref, *, relu):
    """out = [relu]((A @ W) * scale + bias), accumulated over the K grid axis."""
    @pl.when(pl.program_id(1) == 0)
    def _init():
        acc_ref[...] = jnp.zeros_like(acc_ref)

    acc_ref[...] += jnp.dot(a_ref[...], w_ref[...],
                            preferred_element_type=jnp.float32)

    @pl.when(pl.program_id(1) == pl.num_programs(1) - 1)
    def _finish():
        y = acc_ref[...] * s_ref[...] + b_ref[...]
        if relu:
            y = jnp.maximum(y, 0.0)
        o_ref[...] = y.astype(o_ref.dtype)


@functools.partial(jax.jit, static_argnames=("tm", "tk", "relu", "out_dtype"))
def _fused_matmul_call(a_p, w_p, s_p, b_p, *, tm, tk, relu, out_dtype):
    Mp, Kp = a_p.shape
    Np = w_p.shape[1]
    grid = (Mp // tm, Kp // tk)
    return pl.pallas_call(
        functools.partial(_fused_matmul_kernel, relu=relu),
        out_shape=jax.ShapeDtypeStruct((Mp, Np), out_dtype),
        grid_spec=pltpu.PrefetchScalarGridSpec(
            num_scalar_prefetch=0,
            grid=grid,
            in_specs=[
                pl.BlockSpec((tm, tk), lambda i, k: (i, k)),
                pl.BlockSpec((tk, Np), lambda i, k: (k, 0)),
                pl.BlockSpec((1, Np), lambda i, k: (0, 0)),
                pl.BlockSpec((1, Np), lambda i, k: (0, 0)),
            ],
            out_specs=pl.BlockSpec((tm, Np), lambda i, k: (i, 0)),
            scratch_shapes=[pltpu.VMEM((tm, Np), jnp.float32)],
        ),
        compiler_params=pltpu.CompilerParams(
            dimension_semantics=("parallel", "arbitrary"),
            vmem_limit_bytes=VMEM_LIMIT),
    )(a_p, w_p, s_p, b_p)


def fused_matmul(a, w, scale, bias, *, relu, out_dtype):
    """a: (M, K), w: (K, N), scale/bias: (N,). Exact tile-multiple padding, bf16 MXU
    inputs with f32 accumulation, small-K path for K<=128."""
    M, K = a.shape
    N = w.shape[1]
    tm = _pick_tm(M)
    tk = _pick_tk(K)
    Mp = tm * _cdiv(M, tm)
    Kp = tk * _cdiv(K, tk)
    Np = 128 * _cdiv(N, 128)

    if a.dtype != jnp.bfloat16:
        a = a.astype(jnp.bfloat16)
    if w.dtype != jnp.bfloat16:
        w = w.astype(jnp.bfloat16)
    if Mp != M or Kp != K:
        a = jnp.pad(a, ((0, Mp - M), (0, Kp - K)))
    if Kp != K or Np != N:
        w = jnp.pad(w, ((0, Kp - K), (0, Np - N)))

    s_p = scale.astype(jnp.float32).reshape(1, N)
    b_p = bias.astype(jnp.float32).reshape(1, N)
    if Np != N:
        s_p = jnp.pad(s_p, ((0, 0), (0, Np - N)))
        b_p = jnp.pad(b_p, ((0, 0), (0, Np - N)))

    out = _fused_matmul_call(a, w, s_p, b_p, tm=tm, tk=tk, relu=relu,
                             out_dtype=out_dtype)
    if Mp != M or Np != N:
        out = out[:M, :N]
    return out


def _l2norm_kernel(x_ref, w_ref, o_ref):
    x = x_ref[...].astype(jnp.float32)
    ss = jnp.sum(x * x, axis=-1, keepdims=True)
    inv = pl.reciprocal(jnp.sqrt(ss) + 1e-10, approx=True)   # EUP, not a VPU divide
    o_ref[...] = (x * inv * w_ref[...]).astype(o_ref.dtype)


@jax.jit
def _l2norm_call(xf, w2d):
    Mp, C = xf.shape
    tm = 256
    return pl.pallas_call(
        _l2norm_kernel,
        out_shape=jax.ShapeDtypeStruct((Mp, C), xf.dtype),
        grid=(Mp // tm,),
        in_specs=[pl.BlockSpec((tm, C), lambda i: (i, 0)),
                  pl.BlockSpec((1, C), lambda i: (0, 0))],
        out_specs=pl.BlockSpec((tm, C), lambda i: (i, 0)),
        compiler_params=pltpu.CompilerParams(
            dimension_semantics=("parallel",),
            vmem_limit_bytes=VMEM_LIMIT),
    )(xf, w2d)


# ---------------------------------------------------------------------------
# Conv / pool / norm wrappers. im2col assembly is JAX glue fused by jit; the hot
# path (matmul + BN + ReLU epilogue, L2 normalization) runs in Pallas.
# ---------------------------------------------------------------------------
def _im2col(x, kh, kw, stride, pad):
    B, H, W, C = x.shape
    if kh == 1 and kw == 1 and stride == 1 and pad == 0:
        return x.reshape(B * H * W, C), (B, H, W)
    if pad:
        x = jnp.pad(x, ((0, 0), (pad, pad), (pad, pad), (0, 0)))
        H += 2 * pad
        W += 2 * pad
    OH = (H - kh) // stride + 1
    OW = (W - kw) // stride + 1
    cols = []
    for di in range(kh):
        for dj in range(kw):
            cols.append(x[:, di:di + stride * (OH - 1) + 1:stride,
                             dj:dj + stride * (OW - 1) + 1:stride, :])
    patches = jnp.concatenate(cols, axis=-1)          # (B, OH, OW, kh*kw*C)
    return patches.reshape(B * OH * OW, kh * kw * C), (B, OH, OW)


@functools.partial(jax.jit, static_argnames=("stride", "pad", "relu", "out_dtype"))
def _conv2d_impl(x, w, scale, bias, *, stride, pad, relu, out_dtype):
    kh, kw, cin, cout = w.shape
    a, (B, OH, OW) = _im2col(x, kh, kw, stride, pad)
    out = fused_matmul(a, w.reshape(kh * kw * cin, cout), scale, bias,
                       relu=relu, out_dtype=out_dtype)
    return out.reshape(B, OH, OW, cout)


def conv2d(x, p, relu, out_dtype=jnp.bfloat16):
    return _conv2d_impl(x, p["w"], p["scale"], p["bias"],
                        stride=p["stride"], pad=p["pad"],
                        relu=relu, out_dtype=out_dtype)


def maxpool2d(x, kernel, stride, padding=0, ceil_mode=False):
    """PyTorch-compatible max pooling via a single-pass reduce_window (no kernel^2
    patch materialization in HBM)."""
    B, H, W, C = x.shape

    def out_size(n):
        if ceil_mode:
            o = -(-(n + 2 * padding - kernel) // stride) + 1
            if (o - 1) * stride >= n + padding:   # last window must start in input+left pad
                o -= 1
        else:
            o = (n + 2 * padding - kernel) // stride + 1
        return o

    OH, OW = out_size(H), out_size(W)
    pad_h_hi = max(0, (OH - 1) * stride + kernel - H - padding)
    pad_w_hi = max(0, (OW - 1) * stride + kernel - W - padding)
    neg = jnp.array(-jnp.inf, x.dtype)
    out = jax.lax.reduce_window(
        x, neg, jax.lax.max,
        window_dimensions=(1, kernel, kernel, 1),
        window_strides=(1, stride, stride, 1),
        padding=((0, 0), (padding, pad_h_hi), (padding, pad_w_hi), (0, 0)))
    assert out.shape == (B, OH, OW, C), (out.shape, (B, OH, OW, C))
    return out


def l2norm(x, weight):
    B, H, W, C = x.shape
    M = B * H * W
    Mp = 256 * _cdiv(M, 256)
    xf = x.reshape(M, C)
    if Mp != M:
        xf = jnp.pad(xf, ((0, Mp - M), (0, 0)))
    out = _l2norm_call(xf, weight.reshape(1, C))
    if Mp != M:
        out = out[:M]
    return out.reshape(B, H, W, C)


# ---------------------------------------------------------------------------
# Deterministic parameter construction (shapes follow the PyTorch __init__).
# ---------------------------------------------------------------------------
class _Keys:
    def __init__(self, key):
        self._key = key

    def next(self):
        self._key, sub = jax.random.split(self._key)
        return sub


def _he_weight(key, kh, kw, cin, cout):
    fan_in = kh * kw * cin
    return jax.random.normal(key, (kh, kw, cin, cout), jnp.float32) * (2.0 / fan_in) ** 0.5


def make_conv_bn(keys, cin, cout, kernel=3, stride=1, padding=0):
    # ConvLayer = Conv2d(bias=False) + BatchNorm2d + ReLU (ReLU fused at call site)
    pad = kernel // 2 if padding == 0 else padding
    return {
        "w": _he_weight(keys.next(), kernel, kernel, cin, cout).astype(jnp.bfloat16),
        "scale": jnp.full((cout,), 1.0 / (1.0 + 1e-5) ** 0.5, jnp.float32),  # eval-mode BN
        "bias": jnp.zeros((cout,), jnp.float32),
        "stride": stride,
        "pad": pad,
    }


def make_conv_bias(keys, cin, cout, kernel, stride=1, pad=0):
    # plain Conv2d with bias (extras)
    return {
        "w": _he_weight(keys.next(), kernel, kernel, cin, cout).astype(jnp.bfloat16),
        "scale": jnp.ones((cout,), jnp.float32),
        "bias": jax.random.normal(keys.next(), (cout,), jnp.float32) * 0.01,
        "stride": stride,
        "pad": pad,
    }


def get_link(layer, base_ch, growth_rate, grmul):
    if layer == 0:
        return base_ch, 0, []
    out_channels = growth_rate
    link = []
    for i in range(10):
        dv = 2 ** i
        if layer % dv == 0:
            k = layer - dv
            link.append(k)
            if i > 0:
                out_channels *= grmul
    out_channels = int(int(out_channels + 1) / 2) * 2
    in_channels = 0
    for i in link:
        ch, _, _ = get_link(i, base_ch, growth_rate, grmul)
        in_channels += ch
    return out_channels, in_channels, link


def make_hardblock(keys, in_channels, growth_rate, grmul, n_layers):
    links, layers = [], []
    out_channels = 0
    for i in range(n_layers):
        outch, inch, link = get_link(i + 1, in_channels, growth_rate, grmul)
        links.append(link)
        layers.append(make_conv_bn(keys, inch, outch, kernel=3))
        if i % 2 == 0 or i == n_layers - 1:
            out_channels += outch
    return {"layers": layers, "links": links, "out_channels": out_channels}


def hardblock_forward(x, blk):
    layers_ = [x]
    for lp, link in zip(blk["layers"], blk["links"]):
        tin = [layers_[i] for i in link]
        xin = jnp.concatenate(tin, axis=-1) if len(tin) > 1 else tin[0]
        layers_.append(conv2d(xin, lp, relu=True))
    t = len(layers_)
    outs = [layers_[i] for i in range(t) if i == t - 1 or i % 2 == 1]  # keepBase=False
    return jnp.concatenate(outs, axis=-1)


def make_hardnet85_base(keys):
    first_ch = [48, 96]
    ch_list = [192, 256, 320, 480, 720]
    grmul = 1.7
    gr = [24, 24, 28, 36, 48]
    n_layers = [8, 16, 16, 16, 16]
    base = []
    base.append(("conv", make_conv_bn(keys, 3, first_ch[0], kernel=3, stride=2)))
    base.append(("conv", make_conv_bn(keys, first_ch[0], first_ch[1], kernel=3)))
    base.append(("maxpool", dict(kernel=3, stride=2, padding=1, ceil_mode=False)))
    ch = first_ch[1]
    blks = len(n_layers)
    for i in range(blks):
        blk = make_hardblock(keys, ch, gr[i], grmul, n_layers[i])
        ch = blk["out_channels"]
        base.append(("hardblock", blk))
        base.append(("conv", make_conv_bn(keys, ch, ch_list[i], kernel=1)))
        ch = ch_list[i]
        if i == 0:
            base.append(("maxpool", dict(kernel=2, stride=2, padding=0, ceil_mode=True)))
        elif i != blks - 1 and i != 1 and i != 3:
            base.append(("maxpool", dict(kernel=2, stride=2, padding=0, ceil_mode=False)))
    return base


def apply_base_module(x, mod):
    kind, p = mod
    if kind == "conv":
        return conv2d(x, p, relu=True)
    if kind == "hardblock":
        return hardblock_forward(x, p)
    return maxpool2d(x, p["kernel"], p["stride"], p["padding"], p["ceil_mode"])


EXTRAS_CFG_300 = [256, 'S', 512, 128, 'S', 256, 128, 256, 128, 256]
MBOX_300 = [4, 6, 6, 6, 4, 4]


def make_extras(keys, cfg, in_ch):
    # standard SSD add_extras()
    layers = []
    in_channels = in_ch
    flag = False
    for k, v in enumerate(cfg):
        if in_channels != 'S':
            if v == 'S':
                layers.append(make_conv_bias(keys, in_channels, cfg[k + 1],
                                             kernel=(1, 3)[flag], stride=2, pad=1))
            else:
                layers.append(make_conv_bias(keys, in_channels, v,
                                             kernel=(1, 3)[flag], stride=1, pad=0))
            flag = not flag
        in_channels = v
    return layers


def build_ssd_params(key, num_classes):
    keys = _Keys(key)
    base = make_hardnet85_base(keys)
    bridge = [make_conv_bn(keys, 720, 960, kernel=3),
              make_conv_bn(keys, 960, 720, kernel=1)]
    extras = make_extras(keys, EXTRAS_CFG_300, 720)
    src_channels = [320, 720, 512, 256, 256, 256]
    # loc and conf heads fused along Cout (single matmul per source; outputs split later).
    heads = []
    for c, m in zip(src_channels, MBOX_300):
        lw = _he_weight(keys.next(), 3, 3, c, m * 4)
        lb = jax.random.normal(keys.next(), (m * 4,), jnp.float32) * 0.01
        cw = _he_weight(keys.next(), 3, 3, c, m * num_classes)
        cb = jax.random.normal(keys.next(), (m * num_classes,), jnp.float32) * 0.01
        heads.append({
            "w": jnp.concatenate([lw, cw], axis=-1).astype(jnp.bfloat16),
            "scale": jnp.ones((m * 4 + m * num_classes,), jnp.float32),
            "bias": jnp.concatenate([lb, cb]),
            "stride": 1,
            "pad": 1,
            "split": m * 4,
        })
    return {
        "base": base,
        "bridge": bridge,
        "extras": extras,
        "l2norm_weight": jnp.full((320,), 20.0, jnp.float32),   # L2Norm(320, 20)
        "heads": heads,
    }


def ssd_forward(params, x_nchw, num_classes):
    """Matches SSD.forward(x, test=False)."""
    x = jnp.transpose(x_nchw, (0, 2, 3, 1)).astype(jnp.bfloat16)   # NCHW -> NHWC, bf16 acts
    base = params["base"]
    sources, loc, conf = [], [], []

    for k in range(10):
        x = apply_base_module(x, base[k])
    sources.append(l2norm(x, params["l2norm_weight"]))

    for k in range(10, len(base)):
        x = apply_base_module(x, base[k])

    # bridge = MaxPool(3,1,1) -> ConvLayer(720, 960) -> ConvLayer(960, 720, kernel=1)
    x = maxpool2d(x, kernel=3, stride=1, padding=1, ceil_mode=False)
    x = conv2d(x, params["bridge"][0], relu=True)
    x = conv2d(x, params["bridge"][1], relu=True)
    sources.append(x)

    for k, p in enumerate(params["extras"]):
        x = conv2d(x, p, relu=True)            # F.relu(v(x)) fused into the kernel epilogue
        if k % 2 == 1:
            sources.append(x)

    for s, hp in zip(sources, params["heads"]):
        out = conv2d(s, hp, relu=False, out_dtype=jnp.float32)  # fused loc+conf head
        split = hp["split"]
        lo = out[..., :split]                  # NHWC output == permute(0, 2, 3, 1)
        co = out[..., split:]
        loc.append(lo.reshape(lo.shape[0], -1))
        conf.append(co.reshape(co.shape[0], -1))
    loc = jnp.concatenate(loc, axis=1)
    conf = jnp.concatenate(conf, axis=1)
    return (loc.reshape(loc.shape[0], -1, 4),
            conf.reshape(conf.shape[0], -1, num_classes))


if __name__ == "__main__":
    num_classes = 21
    size = 300      # smallest input the standard '300' extras chain supports
    batch = 2

    key = jax.random.PRNGKey(0)
    pkey, xkey = jax.random.split(key)
    params = build_ssd_params(pkey, num_classes)
    x = jax.random.normal(xkey, (batch, 3, size, size), jnp.float32)

    loc, conf = ssd_forward(params, x, num_classes)
    loc = jax.block_until_ready(loc)
    conf = jax.block_until_ready(conf)

    num_priors = 38 * 38 * 4 + 19 * 19 * 6 + 10 * 10 * 6 + 5 * 5 * 6 + 3 * 3 * 4 + 1 * 1 * 4
    assert loc.shape == (batch, num_priors, 4), loc.shape
    assert conf.shape == (batch, num_priors, num_classes), conf.shape
    assert bool(jnp.all(jnp.isfinite(loc))) and bool(jnp.all(jnp.isfinite(conf)))
    print("KERNEL_OK")
</pallas_src>

<mosaic_0001>
module attributes {stable_mosaic.version = 11 : i64} {
  func.func @_fused_matmul_kernel(%arg0: i32, %arg1: i32, %arg2: memref<512x128xbf16, #tpu.memory_space<vmem>>, %arg3: memref<128x128xbf16, #tpu.memory_space<vmem>>, %arg4: memref<1x128xf32, #tpu.memory_space<vmem>>, %arg5: memref<1x128xf32, #tpu.memory_space<vmem>>, %arg6: memref<512x128xbf16, #tpu.memory_space<vmem>>, %arg7: memref<512x128xf32, #tpu.memory_space<vmem>>) attributes {dimension_semantics = [#tpu.dimension_semantics<parallel>, #tpu.dimension_semantics<arbitrary>], iteration_bounds = array<i64: 88, 1>, scalar_prefetch = 0 : i64, scratch_operands = 1 : i64, tpu.core_type = #tpu.core_type<tc>, window_params = [{transform_indices = @transform_0, window_bounds = array<i64: 512, 128>}, {transform_indices = @transform_1, window_bounds = array<i64: 128, 128>}, {pipeline_mode = #tpu.pipeline_mode<synchronous>, transform_indices = @transform_2, window_bounds = array<i64: 1, 128>}, {pipeline_mode = #tpu.pipeline_mode<synchronous>, transform_indices = @transform_3, window_bounds = array<i64: 1, 128>}, {transform_indices = @transform_4, window_bounds = array<i64: 512, 128>}]} {
    %c0_i32 = arith.constant 0 : i32
    %0 = arith.cmpi eq, %arg1, %c0_i32 : i32
    %1 = arith.extui %0 : i1 to i32
    %c0_i32_0 = arith.constant 0 : i32
    %2 = arith.cmpi ne, %1, %c0_i32_0 : i32
    scf.if %2 {
      %cst_10 = arith.constant 0.000000e+00 : f32
      %12 = vector.broadcast %cst_10 : f32 to vector<512x128xf32>
      %c0_11 = arith.constant 0 : index
      %c0_12 = arith.constant 0 : index
      %13 = vector.load %arg7[%c0_11, %c0_12] : memref<512x128xf32, #tpu.memory_space<vmem>>, vector<512x128xf32>
      tpu.vector_store %arg7[%c0_11, %c0_12], %12 {strides = array<i32>} : memref<512x128xf32, #tpu.memory_space<vmem>>, vector<512x128xf32>,
    } else {
    }
    %c0 = arith.constant 0 : index
    %c0_1 = arith.constant 0 : index
    %3 = vector.load %arg7[%c0, %c0_1] : memref<512x128xf32, #tpu.memory_space<vmem>>, vector<512x128xf32>
    %c0_2 = arith.constant 0 : index
    %c0_3 = arith.constant 0 : index
    %4 = vector.load %arg2[%c0_2, %c0_3] : memref<512x128xbf16, #tpu.memory_space<vmem>>, vector<512x128xbf16>
    %c0_4 = arith.constant 0 : index
    %c0_5 = arith.constant 0 : index
    %5 = vector.load %arg3[%c0_4, %c0_5] : memref<128x128xbf16, #tpu.memory_space<vmem>>, vector<128x128xbf16>
    %cst = arith.constant dense<0.000000e+00> : vector<512x128xf32>
    %6 = tpu.matmul %4, %5, %cst {dimension_numbers = #tpu.dot_dimension_numbers<[1], [0], [0], [1], [0, 0, 1, 1], [], []>} : vector<512x128xbf16>, vector<128x128xbf16>, vector<512x128xf32> -> vector<512x128xf32>
    %7 = arith.addf %3, %6 : vector<512x128xf32>
    %c0_6 = arith.constant 0 : index
    %c0_7 = arith.constant 0 : index
    %8 = vector.load %arg7[%c0_6, %c0_7] : memref<512x128xf32, #tpu.memory_space<vmem>>, vector<512x128xf32>
    tpu.vector_store %arg7[%c0_6, %c0_7], %7 {strides = array<i32>} : memref<512x128xf32, #tpu.memory_space<vmem>>, vector<512x128xf32>,
    %c0_i32_8 = arith.constant 0 : i32
    %9 = arith.cmpi eq, %arg1, %c0_i32_8 : i32
    %10 = arith.extui %9 : i1 to i32
    %c0_i32_9 = arith.constant 0 : i32
    %11 = arith.cmpi ne, %10, %c0_i32_9 : i32
    scf.if %11 {
      %c0_10 = arith.constant 0 : index
      %c0_11 = arith.constant 0 : index
      %12 = vector.load %arg7[%c0_10, %c0_11] : memref<512x128xf32, #tpu.memory_space<vmem>>, vector<512x128xf32>
      %c0_12 = arith.constant 0 : index
      %c0_13 = arith.constant 0 : index
      %13 = vector.load %arg4[%c0_12, %c0_13] : memref<1x128xf32, #tpu.memory_space<vmem>>, vector<1x128xf32>
      %14 = vector.broadcast %13 : vector<1x128xf32> to vector<512x128xf32>
      %15 = arith.mulf %12, %14 : vector<512x128xf32>
      %c0_14 = arith.constant 0 : index
      %c0_15 = arith.constant 0 : index
      %16 = vector.load %arg5[%c0_14, %c0_15] : memref<1x128xf32, #tpu.memory_space<vmem>>, vector<1x128xf32>
      %17 = vector.broadcast %16 : vector<1x128xf32> to vector<512x128xf32>
      %18 = arith.addf %15, %17 : vector<512x128xf32>
      %cst_16 = arith.constant 0.000000e+00 : f32
      %19 = vector.broadcast %cst_16 : f32 to vector<512x128xf32>
      %20 = arith.maximumf %18, %19 : vector<512x128xf32>
      %21 = arith.truncf %20 : vector<512x128xf32> to vector<512x128xbf16>
      %c0_17 = arith.constant 0 : index
      %c0_18 = arith.constant 0 : index
      %22 = vector.load %arg6[%c0_17, %c0_18] : memref<512x128xbf16, #tpu.memory_space<vmem>>, vector<512x128xbf16>
      tpu.vector_store %arg6[%c0_17, %c0_18], %21 {strides = array<i32>} : memref<512x128xbf16, #tpu.memory_space<vmem>>, vector<512x128xbf16>,
    } else {
    }
    return
  }
  func.func @transform_0(%arg0: i32, %arg1: i32) -> (i32, i32) {
    %c0_i32 = arith.constant 0 : i32
    return %arg0, %arg1 : i32, i32
  }
  func.func @transform_1(%arg0: i32, %arg1: i32) -> (i32, i32) {
    %c0_i32 = arith.constant 0 : i32
    %c0_i32_0 = arith.constant 0 : i32
    return %arg1, %c0_i32 : i32, i32
  }
  func.func @transform_2(%arg0: i32, %arg1: i32) -> (i32, i32) {
    %c0_i32 = arith.constant 0 : i32
    %c0_i32_0 = arith.constant 0 : i32
    %c0_i32_1 = arith.constant 0 : i32
    return %c0_i32, %c0_i32_0 : i32, i32
  }
  func.func @transform_3(%arg0: i32, %arg1: i32) -> (i32, i32) {
    %c0_i32 = arith.constant 0 : i32
    %c0_i32_0 = arith.constant 0 : i32
    %c0_i32_1 = arith.constant 0 : i32
    return %c0_i32, %c0_i32_0 : i32, i32
  }
  func.func @transform_4(%arg0: i32, %arg1: i32) -> (i32, i32) {
    %c0_i32 = arith.constant 0 : i32
    %c0_i32_0 = arith.constant 0 : i32
    return %arg0, %c0_i32 : i32, i32
  }
}

</mosaic_0001>

<bundles_post_ra>
// kernel: _fused_matmul_call.1
= control target key start
LH: loop header
LB: loop body
LE: loop exit
PB: predicated region body
PF: predicated region fallthrough
CT: control target
= control target key end

     0   :  { %9 = vsyncpa [#allocation4], 0  ;;  %s3169_s0 = inlined_call_operand.hbm [shape: bf16[45056,128], index: 0, kind: input, shape index: {}]   ;;  %s3170_s1 = inlined_call_operand.hbm [shape: bf16[128,128], index: 1, kind: input, shape index: {}]   ;;  %s3171_s2 = inlined_call_operand.hbm [shape: f32[1,128], index: 2, kind: input, shape index: {}]   ;;  %s3172_s3 = inlined_call_operand.hbm [shape: f32[1,128], index: 3, kind: input, shape index: {}]   ;;  %s3173_s4 = inlined_call_operand.hbm [shape: bf16[45056,128], index: 4, kind: output, shape index: {}]  }
   0x1   :  { %11 = vsyncpa [#allocation4 + $0x1], 0 }
   0x2   :  { %12 = vsyncpa [#allocation7], 0 }
   0x3   :  { %13 = vsyncpa [#allocation10], 0 }
   0x4   :  { %14 = vsyncpa [#allocation5], 0 }
   0x5   :  { %16 = vsyncpa [#allocation5 + $0x1], 0  ;;  %s2760_s15 = smov 0   ;;  %s2762_s16 = smov 0  }
   0x6   :  { %s2764_s17 = smov 0   ;;  %s2766_s18 = smov 0  }
   0x7   :  { %s2768_s19 = smov 0   ;;  %s2770_s20 = smov 0  }
   0x8 LB: > { %s1873_s21 = sadd.s32 4294967295, %s2724_s20   ;;  %s1874_s22 = sadd.s32 4294967294, %s2724_s20   ;;  %s2724_s20 = sphi %s2770_s20, %s22_s20   ;;  %s2720_s19 = sphi %s2768_s19, %s3196_s19   ;;  %s2716_s18 = sphi %s2766_s18, %s3195_s18   ;;  %s2712_s17 = sphi %s2764_s17, %s3194_s17   ;;  %s2708_s16 = sphi %s2762_s16, %s3193_s16   ;;  %s2704_s15 = sphi %s2760_s15, %s3192_s15  }
   0x9   : > { %p56_p0 = scmp.ne.s32.totalorder %s2708_s16, %s2704_s15  ;;  %p2794_p1 = scmp.eq.s32.totalorder %s1873_s21, 0 }
   0xa   : > { %p2798_p2 = scmp.eq.s32.totalorder %s1873_s21, 87  ;;  %p154_p3 = scmp.eq.s32.totalorder %s1874_s22, 87 }
   0xb   : > { %s3179_s23 = scalar_select %p2794_p1, 1, 0 }
   0xc   : > { %p2804_p4 = por %p2794_p1, %p56_p0  ;;  %p1875_p5 = scmp.ge.s32.totalorder %s2724_s20, 1 }
   0xd   : > { %p2809_p6 = por %p154_p3, %p56_p0  ;;  %p161_p7 = scmp.lt.s32.totalorder %s2724_s20, 89 }
   0xe   : > { %s3181_s25 = scalar_select %p2804_p4, 1, 0 }
   0xf   : > { %s3182_s26 = scalar_select %p2809_p6, 1, 0 }
  0x10   : > { %p2814_p8 = pnand %p1875_p5, %p161_p7  ;;  %s2726_s28 = smov [#allocation6]  }
  0x11   : > { %s176_s29 = sshll.u32 %s2726_s28, 4  ;;  %s2727_s5 = smov [#allocation8]   ;;  %s177_s29 = int_to_ptr.vmem [resolvable:$true] %s176_s29 }
  0x12   : > { %p2409_p9 = pneg %p2814_p8  ;;  %s190_s6 = sshll.u32 %s2727_s5, 4  ;;  %s191_s6 = int_to_ptr.vmem [resolvable:$true] %s190_s6 }
  0x13   : > { %s2728_s7 = smov [#allocation9]   ;;  %s2541_s9 = scalar_lea.vmem %s177_s29, 1024 }
  0x14   : > { %p2822_p10 = pnand %p2409_p9, %p2794_p1  ;;  %s201_s8 = sshll.u32 %s2728_s7, 4  ;;  %s202_s8 = int_to_ptr.vmem [resolvable:$true] %s201_s8 }
  0x15   : > { %p2542_p12 = scmp.ne.s32.totalorder %s177_s29, %s2541_s9  ;;  %p2549_p3 = scmp.lt.s32.totalorder %s177_s29, %s177_s29 }
  0x16   : > { %p2532_p11 = pneg %p2822_p10  ;;  %p2550_p5 = scmp.lt.s32.totalorder %s2541_s9, %s2541_s9 }
  0x18   : > { %p2544_p13 = pnand %p2542_p12, %p2532_p11  ;;  %p2551_p7 = por %p2550_p5, %p2549_p3 }
  0x1a   : > { %p2545_p0 = pneg %p2544_p13 }
  0x1c   : > { %p2552_p9 = pnand %p2551_p7, %p2545_p0 }
  0x1e   : > { %2555 = shalt.err (!%p2552_p9)
}
  0x1f   : > { %s3177_s10 = smov 64   ;;  %s3178_s11 = smov 4  }
  0x20   : > { %2412 = dma.hbm_to_vmem [thread:$0]  (!%p2822_p10), %s3170_s1, 1024, %s177_s29, [#allocation7], %s3177_s10, %s3177_s10, %s3178_s11  }
  0x21   : > { %s2567_s14 = scalar_lea.vmem %s191_s6, 16  ;;  %s2574_s21 = scalar_lea.vmem %s191_s6, 32 }
  0x22   : > { %p2568_p12 = scmp.ne.s32.totalorder %s191_s6, %s2567_s14  ;;  %p2575_p0 = scmp.lt.s32.totalorder %s191_s6, %s191_s6 }
  0x23   : > { %p2576_p5 = scmp.lt.s32.totalorder %s2574_s21, %s2567_s14 }
  0x24   : > { %p2570_p13 = pnand %p2568_p12, %p2532_p11 }
  0x25   : > { %p2577_p7 = por %p2576_p5, %p2575_p0 }
  0x26   : > { %p2571_p3 = pneg %p2570_p13 }
  0x28   : > { %p2578_p9 = pnand %p2577_p7, %p2571_p3 }
  0x2a   : > { %2581 = shalt.err (!%p2578_p9)
}
  0x2b   : > { %2415 = dma.hbm_to_vmem [thread:$0]  (!%p2822_p10), %s3171_s2, 16, %s191_s6, [#allocation7]  }
  0x2c   : > { %s2593_s29 = scalar_lea.vmem %s202_s8, 16  ;;  %s2600_s5 = scalar_lea.vmem %s202_s8, 32 }
  0x2d   : > { %p2594_p6 = scmp.ne.s32.totalorder %s202_s8, %s2593_s29  ;;  %p2601_p1 = scmp.lt.s32.totalorder %s202_s8, %s202_s8 }
  0x2e   : > { %p2602_p4 = scmp.lt.s32.totalorder %s2600_s5, %s2593_s29 }
  0x2f   : > { %p2596_p12 = pnand %p2594_p6, %p2532_p11 }
  0x30   : > { %p2603_p0 = por %p2602_p4, %p2601_p1 }
  0x31   : > { %p2597_p13 = pneg %p2596_p12 }
  0x33   : > { %p2604_p3 = pnand %p2603_p0, %p2597_p13 }
  0x35   : > { %2607 = shalt.err (!%p2604_p3)
}
  0x36   : > { %2418 = dma.hbm_to_vmem [thread:$0]  (!%p2822_p10), %s3172_s3, 16, %s202_s8, [#allocation10]  }
  0x37   : > { %s43_s6 = sadd.s32 1, %s2712_s17  ;;  %s34_s12 = sadd.s32 1, %s2720_s19 }
  0x38   : > { %p50_p1 = scmp.ne.s32.totalorder %s2712_s17, %s2708_s16  ;;  %p36_p4 = scmp.ge.s32.totalorder %s34_s12, 88 }
  0x39   : > { %p51_p6 = scmp.eq.s32.totalorder %s2724_s20, 0  ;;  %p2430_p5 = scmp.lt.s32.totalorder %s2724_s20, 88 }
  0x3a   : > { %p2862_p11 = por %p2798_p2, %p50_p1  ;;  %s3198_s12 = smov (%p36_p4, %s34_s12), 0 }
  0x3b   : > { %p52_p7 = por %p51_p6, %p50_p1  ;;  %s212_s13 = sand.u32 1, %s2712_s17  }
  0x3c   : > { %s38_s14 = ssub.s32 %s2720_s19, %s3198_s12  ;;  %s1880_s8 = sshll.u32 %s212_s13, 8 }
  0x3d   : > { %p41_p9 = scmp.eq.s32.totalorder %s38_s14, 0  ;;  %s2000_s21 = sshll.u32 %s2720_s19, 12 }
  0x3e   : > { %s223_s24 = scalar_lea.hbm %s3169_s0, %s2000_s21  ;;  %s216_s5 = scalar_lea.vmem [#allocation3], %s1880_s8 }
  0x3f   : > { %s2874_s22 = scalar_select %p41_p9, %s2712_s17, %s43_s6  }
  0x40   : > { %s224_s7 = sshll.u32 %s216_s5, 4  ;;  %p2881_p2 = pnand %p2430_p5, %p52_p7  ;;  %s225_s7 = int_to_ptr.vmem [resolvable:$true] %s224_s7 }
  0x41   : > { %s213_s10 = scalar_lea.sflag [#allocation4], %s212_s13  ;;  %s2621_s14 = scalar_lea.vmem %s225_s7, 4096 }
  0x42   : > { %p2610_p10 = pneg %p2881_p2  ;;  %p2622_p12 = scmp.ne.s32.totalorder %s225_s7, %s2621_s14 }
  0x43   : > { %s2731_s6 = smov [#allocation3]  }
  0x44   : > { %p2624_p13 = pnand %p2622_p12, %p2610_p10  ;;  %s2626_s11 = sshll.u32 %s2731_s6, 4  ;;  %s2627_s11 = int_to_ptr.vmem [resolvable:$false] %s2626_s11 }
  0x45   : > { %s2628_s21 = scalar_lea.vmem %s2627_s11, 8192  ;;  %p2629_p3 = scmp.lt.s32.totalorder %s225_s7, %s2627_s11 }
  0x46   : > { %p2625_p0 = pneg %p2624_p13  ;;  %p2630_p1 = scmp.lt.s32.totalorder %s2628_s21, %s2621_s14 }
  0x48   : > { %p2631_p4 = por %p2630_p1, %p2629_p3 }
  0x4a   : > { %p2632_p6 = pnand %p2631_p4, %p2625_p0 }
  0x4c   : > { %2635 = shalt.err (!%p2632_p6)
}
  0x4d   : > { %s3187_s8 = smov 4   ;;  %s3188_s28 = smov 64  }
  0x4e   : > { %2422 = dma.hbm_to_vmem [thread:$0]  (!%p2881_p2), %s223_s24, 4096, %s225_s7, %s213_s10, %s3188_s28, %s3188_s28, %s3187_s8  }
  0x4f   : > { %236 = sbr.rel (%p2814_p8) target bundleno = 400 (0x190), region = 36  ;;  %s2895_s13 = sand.u32 (!%p2814_p8), 1, %s2708_s16  }
  0x50   : > { %s1884_s11 = sshll.u32 (!%p2814_p8), %s2895_s13, 8  ;;  %s239_s29 = scalar_lea.sflag (!%p2814_p8), [#allocation4], %s2895_s13 }
  0x51   : > { %s2901_s5 = scalar_lea.vmem (!%p2814_p8), [#allocation3], %s1884_s11  ;;  %p3189_p5 = scmp.ne.s32.totalorder (!%p2814_p8), %s3181_s25, 0 }
  0x54   : > { %2687 = dma.done.wait (%p3189_p5), %s239_s29, 4096  }
  0x55   : > { %2689 = vsyncadd (%p3189_p5), %s239_s29, 4294963200  ;;  %p3190_p7 = scmp.ne.s32.totalorder %s3179_s23, 0 }
  0x57   : > { %2691 = dma.done.wait (%p3190_p7), [#allocation7], 1040  }
  0x58   : > { %2693 = vsyncadd (%p3190_p7), [#allocation7], 4294966256 }
  0x59   : > { %2695 = dma.done.wait (%p3190_p7), [#allocation10], 16  }
  0x5a   : > { %2697 = vsyncadd (%p3190_p7), [#allocation10], 4294967280  ;;  %v2490_v0 = vld [vmem:[#allocation6 + $0x38] sm:$0xff]   ;;  %v2491_v1 = vld [vmem:[#allocation6 + $0x30] sm:$0xff]   ;;  %s2973_s23 = scalar_lea.vmem [#allocation11], %s1884_s11  ;;  %s2065_s25 = sshll.u32 %s2716_s18, 12 }
  0x5b   : > { %2297 = vmatprep.subr.bf16.mxu0 %v2490_v0  ;;  %2377 = vmatprep.subr.bf16.mxu1 %v2490_v0  ;;  %v2492_v2 = vld [vmem:[#allocation6 + $0x28] sm:$0xff]   ;;  %v2493_v3 = vld [vmem:[#allocation6 + $0x20] sm:$0xff]   ;;  %v2494_v6 = vld [vmem:[#allocation6 + $0x18] sm:$0xff]   ;;  %s1759_s27 = sshll.u32 %s2973_s23, 4  ;;  %s3116_s18 = scalar_lea.hbm %s3173_s4, %s2065_s25  ;;  %s3118_s27 = int_to_ptr.vmem [resolvable:$true] %s1759_s27 }
  0x5c   : > { %2298 = vmatpush3.bf16.msra.mxu0 %v2490_v0  ;;  %2385 = vmatpush3.bf16.msra.mxu1 %v2490_v0  ;;  %v2498_v4 = vld [vmem:[%s2901_s5] sm:$0xff]   ;;  %v2495_v7 = vld [vmem:[#allocation6 + $0x10] sm:$0xff]   ;;  %v2496_v8 = vld [vmem:[#allocation6 + $0x8] sm:$0xff]   ;;  %s1746_s7 = scalar_lea.sflag [#allocation5], %s2895_s13  ;;  %s2636_s9 = scalar_lea.vmem %s3118_s27, 4096 }
  0x5d   : > { %2299 = vmatprep.subr.bf16.mxu0 %v2491_v1  ;;  %2378 = vmatprep.subr.bf16.mxu1 %v2491_v1  ;;  %v2499_v5 = vld [vmem:[%s2901_s5 + $0x80] sm:$0xff]   ;;  %v2500_v10 = vld [vmem:[%s2901_s5 + $0x8] sm:$0xff]   ;;  %v2502_v12 = vld [vmem:[%s2901_s5 + $0x10] sm:$0xff]   ;;  %p2637_p8 = scmp.ne.s32.totalorder %s3118_s27, %s2636_s9  ;;  %s2732_s14 = smov [#allocation11]  }
  0x5e   : > { %2313 = vmatprep.mubr.bf16.mxu0 %v2498_v4  ;;  %2345 = vmatprep.mubr.bf16.mxu1 %v2499_v5  ;;  %v2497_v9 = vld [vmem:[#allocation6] sm:$0xff]   ;;  %v2501_v11 = vld [vmem:[%s2901_s5 + $0x88] sm:$0xff]   ;;  %v2503_v13 = vld [vmem:[%s2901_s5 + $0x90] sm:$0xff]   ;;  %s2640_s6 = sshll.u32 %s2732_s14, 4  ;;  %s2641_s6 = int_to_ptr.vmem [resolvable:$false] %s2640_s6 }
  0x5f   : > { %v2504_v14 = vld [vmem:[%s2901_s5 + $0x18] sm:$0xff]   ;;  %v2506_v16 = vld [vmem:[%s2901_s5 + $0x20] sm:$0xff]   ;;  %v2508_v18 = vld [vmem:[%s2901_s5 + $0x28] sm:$0xff]   ;;  %p2638_p9 = pnand %p2637_p8, %p2862_p11  ;;  %s2642_s21 = scalar_lea.vmem %s2641_s6, 8192 }
  0x60   : > { %2300 = vmatpush3.bf16.msra.mxu0 %v2491_v1  ;;  %2386 = vmatpush3.bf16.msra.mxu1 %v2491_v1  ;;  %v2505_v15 = vld [vmem:[%s2901_s5 + $0x98] sm:$0xff]   ;;  %v2507_v17 = vld [vmem:[%s2901_s5 + $0xa0] sm:$0xff]   ;;  %v2509_v19 = vld [vmem:[%s2901_s5 + $0xa8] sm:$0xff]   ;;  %p2643_p10 = scmp.lt.s32.totalorder %s3118_s27, %s2641_s6  ;;  %p2644_p12 = scmp.lt.s32.totalorder %s2642_s21, %s2636_s9 }
  0x61   : > { %2301 = vmatprep.subr.bf16.mxu0 %v2492_v2  ;;  %2379 = vmatprep.subr.bf16.mxu1 %v2492_v2  ;;  %v2510_v20 = vld [vmem:[%s2901_s5 + $0x30] sm:$0xff]   ;;  %v2512_v22 = vld [vmem:[%s2901_s5 + $0x38] sm:$0xff]   ;;  %v2514_v24 = vld [vmem:[%s2901_s5 + $0x40] sm:$0xff]   ;;  %p2639_p2 = pneg %p2638_p9 }
  0x62   : > { %v2511_v21 = vld [vmem:[%s2901_s5 + $0xb0] sm:$0xff]   ;;  %v2513_v23 = vld [vmem:[%s2901_s5 + $0xb8] sm:$0xff]   ;;  %v2515_v25 = vld [vmem:[%s2901_s5 + $0xc0] sm:$0xff]   ;;  %p2645_p13 = por %p2644_p12, %p2643_p10 }
  0x63   : > { %v2516_v26 = vld [vmem:[%s2901_s5 + $0x48] sm:$0xff]   ;;  %v2518_v28 = vld [vmem:[%s2901_s5 + $0x50] sm:$0xff]   ;;  %v2520_v30 = vld [vmem:[%s2901_s5 + $0x58] sm:$0xff]  }
  0x64   : > { %2302 = vmatpush3.bf16.msra.mxu0 %v2492_v2  ;;  %2387 = vmatpush3.bf16.msra.mxu1 %v2492_v2  ;;  %v2517_v27 = vld [vmem:[%s2901_s5 + $0xc8] sm:$0xff]   ;;  %v2519_v29 = vld [vmem:[%s2901_s5 + $0xd0] sm:$0xff]   ;;  %v2521_v31 = vld [vmem:[%s2901_s5 + $0xd8] sm:$0xff]   ;;  %p2646_p0 = pnand %p2645_p13, %p2639_p2 }
  0x65   : > { %2303 = vmatprep.subr.bf16.mxu0 %v2493_v3  ;;  %2380 = vmatprep.subr.bf16.mxu1 %v2493_v3  ;;  %v2522_v32 = vld [vmem:[%s2901_s5 + $0x60] sm:$0xff]   ;;  %v2524_v34 = vld [vmem:[%s2901_s5 + $0x68] sm:$0xff]   ;;  %v2526_v36 = vld [vmem:[%s2901_s5 + $0x70] sm:$0xff]  }
  0x66   : > { %v2523_v33 = vld [vmem:[%s2901_s5 + $0xe0] sm:$0xff]   ;;  %v2525_v35 = vld [vmem:[%s2901_s5 + $0xe8] sm:$0xff]   ;;  %v2527_v37 = vld [vmem:[%s2901_s5 + $0xf0] sm:$0xff]  }
  0x67   : > { %v2528_v38 = vld [vmem:[%s2901_s5 + $0x78] sm:$0xff]   ;;  %v2947_v40 = vld [vmem:[#allocation8] ss:$0 sm:$0xff]  ;;  %v2951_v45 = vld [vmem:[#allocation9] ss:$0 sm:$0xff] }
  0x68   : > { %2304 = vmatpush3.bf16.msra.mxu0 %v2493_v3  ;;  %2388 = vmatpush3.bf16.msra.mxu1 %v2493_v3  ;;  %v2529_v39 = vld [vmem:[%s2901_s5 + $0xf8] sm:$0xff]  }
  0x69   : > { %2305 = vmatprep.subr.bf16.mxu0 %v2494_v6  ;;  %2381 = vmatprep.subr.bf16.mxu1 %v2494_v6 }
  0x6c   : > { %2306 = vmatpush3.bf16.msra.mxu0 %v2494_v6  ;;  %2389 = vmatpush3.bf16.msra.mxu1 %v2494_v6 }
  0x6d   : > { %2307 = vmatprep.subr.bf16.mxu0 %v2495_v7  ;;  %2382 = vmatprep.subr.bf16.mxu1 %v2495_v7 }
  0x70   : > { %2308 = vmatpush3.bf16.msra.mxu0 %v2495_v7  ;;  %2390 = vmatpush3.bf16.msra.mxu1 %v2495_v7 }
  0x71   : > { %2309 = vmatprep.subr.bf16.mxu0 %v2496_v8  ;;  %2383 = vmatprep.subr.bf16.mxu1 %v2496_v8 }
  0x74   : > { %2310 = vmatpush3.bf16.msra.mxu0 %v2496_v8  ;;  %2391 = vmatpush3.bf16.msra.mxu1 %v2496_v8 }
  0x75   : > { %2311 = vmatprep.subr.bf16.mxu0 %v2497_v9  ;;  %2384 = vmatprep.subr.bf16.mxu1 %v2497_v9 }
  0x78   : > { %2312 = vmatpush3.bf16.msra.mxu0 %v2497_v9  ;;  %2392 = vmatpush3.bf16.msra.mxu1 %v2497_v9 }
  0x7b   : > { %2314 = vmatmul.mubr.bf16.vlgmr.msra.gmra.mxu0 %v2500_v10  ;;  %2346 = vmatmul.mubr.bf16.vlgmr.msra.gmra.mxu1 %v2501_v11 }
  0x7c   : > { %2317 = vmatprep.mubr.bf16.mxu0 %v2502_v12  ;;  %2349 = vmatprep.mubr.bf16.mxu1 %v2503_v13 }
  0x83   : > { %2318 = vmatmul.mubr.bf16.gmra.mxu0 %v2504_v14  ;;  %2350 = vmatmul.mubr.bf16.gmra.mxu1 %v2505_v15 }
  0x84   : > { %2321 = vmatprep.mubr.bf16.mxu0 %v2506_v16  ;;  %2353 = vmatprep.mubr.bf16.mxu1 %v2507_v17 }
  0x8b   : > { %2322 = vmatmul.mubr.bf16.gmra.mxu0 %v2508_v18  ;;  %2354 = vmatmul.mubr.bf16.gmra.mxu1 %v2509_v19 }
  0x8c   : > { %2325 = vmatprep.mubr.bf16.mxu0 %v2510_v20  ;;  %2357 = vmatprep.mubr.bf16.mxu1 %v2511_v21 }
  0x93   : > { %2326 = vmatmul.mubr.bf16.gmra.mxu0 %v2512_v22  ;;  %2358 = vmatmul.mubr.bf16.gmra.mxu1 %v2513_v23 }
  0x94   : > { %2329 = vmatprep.mubr.bf16.mxu0 %v2514_v24  ;;  %2361 = vmatprep.mubr.bf16.mxu1 %v2515_v25 }
  0x9b   : > { %2330 = vmatmul.mubr.bf16.gmra.mxu0 %v2516_v26  ;;  %2362 = vmatmul.mubr.bf16.gmra.mxu1 %v2517_v27 }
  0x9c   : > { %2333 = vmatprep.mubr.bf16.mxu0 %v2518_v28  ;;  %2365 = vmatprep.mubr.bf16.mxu1 %v2519_v29 }
  0xa3   : > { %2334 = vmatmul.mubr.bf16.gmra.mxu0 %v2520_v30  ;;  %2366 = vmatmul.mubr.bf16.gmra.mxu1 %v2521_v31 }
  0xa4   : > { %2337 = vmatprep.mubr.bf16.mxu0 %v2522_v32  ;;  %2369 = vmatprep.mubr.bf16.mxu1 %v2523_v33 }
  0xab   : > { %2338 = vmatmul.mubr.bf16.gmra.mxu0 %v2524_v34  ;;  %2370 = vmatmul.mubr.bf16.gmra.mxu1 %v2525_v35 }
  0xac   : > { %2341 = vmatprep.mubr.bf16.mxu0 %v2526_v36  ;;  %2373 = vmatprep.mubr.bf16.mxu1 %v2527_v37 }
  0xb3   : > { %2342 = vmatmul.mubr.bf16.gmra.mxu0 %v2528_v38  ;;  %2374 = vmatmul.mubr.bf16.gmra.mxu1 %v2529_v39 }
 0x13b   : > { %v2315_v41 = vpop.f32.mrf.mxu0  ;;  %v2347_v42 = vpop.f32.mrf.mxu1 }
 0x13c   : > { %v1228_v43 = vmul.f32 %v2315_v41, %v2947_v40  ;;  %v1260_v44 = vmul.f32 %v2347_v42, %v2947_v40 }
 0x13d   : > { %v769_v46 = vpop.f32.mrf.mxu0  ;;  %v897_v47 = vpop.f32.mrf.mxu1 }
 0x13e   : > { %v1226_v48 = vmul.f32 %v2947_v40, %v769_v46  ;;  %v1258_v49 = vmul.f32 %v2947_v40, %v897_v47  ;;  %v1299_v52 = vadd.f32 %v2951_v45, %v1228_v43  ;;  %v1331_v53 = vadd.f32 %v2951_v45, %v1260_v44 }
 0x13f   : > { %v2316_v50 = vpop.f32.mrf.mxu0  ;;  %v2348_v51 = vpop.f32.mrf.mxu1 }
 0x140   : > { %v1229_v54 = vmul.f32 %v2316_v50, %v2947_v40  ;;  %v1261_v55 = vmul.f32 %v2348_v51, %v2947_v40  ;;  %v1297_v58 = vadd.f32 %v2951_v45, %v1226_v48  ;;  %v1329_v59 = vadd.f32 %v2951_v45, %v1258_v49 }
 0x141   : > { %v772_v56 = vpop.f32.mrf.mxu0  ;;  %v900_v57 = vpop.f32.mrf.mxu1  ;;  %v1363_v2 = vmax.f32 %v1299_v52, 0.0  ;;  %v1395_v3 = vmax.f32 %v1331_v53, 0.0 }
 0x142   : > { %v1227_v60 = vmul.f32 %v2947_v40, %v772_v56  ;;  %v1259_v61 = vmul.f32 %v2947_v40, %v900_v57  ;;  %v1300_v62 = vadd.f32 %v2951_v45, %v1229_v54  ;;  %v1332_v63 = vadd.f32 %v2951_v45, %v1261_v55 }
 0x143   : > { %v2319_v0 = vpop.f32.mrf.mxu0  ;;  %v2351_v1 = vpop.f32.mrf.mxu1  ;;  %v1361_v12 = vmax.f32 %v1297_v58, 0.0  ;;  %v1393_v13 = vmax.f32 %v1329_v59, 0.0 }
 0x144   : > { %v1298_v4 = vadd.f32 %v2951_v45, %v1227_v60  ;;  %v1330_v5 = vadd.f32 %v2951_v45, %v1259_v61  ;;  %v1364_v6 = vmax.f32 %v1300_v62, 0.0  ;;  %v1396_v7 = vmax.f32 %v1332_v63, 0.0 }
 0x145   : > { %v1232_v8 = vmul.f32 %v2319_v0, %v2947_v40  ;;  %v1264_v9 = vmul.f32 %v2351_v1, %v2947_v40  ;;  %v785_v10 = vpop.f32.mrf.mxu0  ;;  %v913_v11 = vpop.f32.mrf.mxu1 }
 0x146   : > { %v1362_v14 = vmax.f32 %v1298_v4, 0.0  ;;  %v1394_v15 = vmax.f32 %v1330_v5, 0.0  ;;  %v2074_v16 = vpack.c.bf16 %v1364_v6, %v1363_v2  ;;  %v2154_v17 = vpack.c.bf16 %v1396_v7, %v1395_v3 }
 0x147   : > { %v1230_v18 = vmul.f32 %v2947_v40, %v785_v10  ;;  %v1262_v19 = vmul.f32 %v2947_v40, %v913_v11  ;;  %v2320_v20 = vpop.f32.mrf.mxu0  ;;  %v2352_v21 = vpop.f32.mrf.mxu1  ;;  %v1303_v24 = vadd.f32 %v2951_v45, %v1232_v8  ;;  %v1335_v25 = vadd.f32 %v2951_v45, %v1264_v9 }
 0x148   : > { %v2069_v22 = vpack.c.bf16 %v1362_v14, %v1361_v12  ;;  %v2149_v23 = vpack.c.bf16 %v1394_v15, %v1393_v13  ;;  %2226 = vst [vmem:[%s2973_s23 + $0x8] sm:$0xff] %v2074_v16   ;;  %2242 = vst [vmem:[%s2973_s23 + $0x88] sm:$0xff] %v2154_v17   ;;  %v1233_v26 = vmul.f32 %v2320_v20, %v2947_v40 }
 0x149   : > { %v1265_v27 = vmul.f32 %v2352_v21, %v2947_v40  ;;  %v788_v28 = vpop.f32.mrf.mxu0  ;;  %v916_v29 = vpop.f32.mrf.mxu1  ;;  %v1301_v30 = vadd.f32 %v2951_v45, %v1230_v18  ;;  %v1333_v31 = vadd.f32 %v2951_v45, %v1262_v19  ;;  %v1367_v43 = vmax.f32 %v1303_v24, 0.0 }
 0x14a   : > { %2070 = vst [vmem:[%s2973_s23] sm:$0xff] %v2069_v22   ;;  %2241 = vst [vmem:[%s2973_s23 + $0x80] sm:$0xff] %v2149_v23   ;;  %v1231_v32 = vmul.f32 %v2947_v40, %v788_v28  ;;  %v1263_v33 = vmul.f32 %v2947_v40, %v916_v29  ;;  %v1304_v34 = vadd.f32 %v2951_v45, %v1233_v26  ;;  %v1399_v44 = vmax.f32 %v1335_v25, 0.0 }
 0x14b   : > { %v1336_v35 = vadd.f32 %v2951_v45, %v1265_v27  ;;  %v2323_v36 = vpop.f32.mrf.mxu0  ;;  %v2355_v37 = vpop.f32.mrf.mxu1  ;;  %v1365_v50 = vmax.f32 %v1301_v30, 0.0  ;;  %v1397_v51 = vmax.f32 %v1333_v31, 0.0 }
 0x14c   : > { %v1302_v38 = vadd.f32 %v2951_v45, %v1231_v32  ;;  %v1334_v39 = vadd.f32 %v2951_v45, %v1263_v33  ;;  %v1236_v41 = vmul.f32 %v2323_v36, %v2947_v40  ;;  %v1268_v42 = vmul.f32 %v2355_v37, %v2947_v40 }
 0x14d   : > { %v1368_v46 = vmax.f32 %v1304_v34, 0.0  ;;  %v1400_v47 = vmax.f32 %v1336_v35, 0.0  ;;  %v801_v48 = vpop.f32.mrf.mxu0  ;;  %v929_v49 = vpop.f32.mrf.mxu1 }
 0x14e   : > { %v1366_v52 = vmax.f32 %v1302_v38, 0.0  ;;  %v1398_v53 = vmax.f32 %v1334_v39, 0.0  ;;  %v1234_v56 = vmul.f32 %v2947_v40, %v801_v48  ;;  %v1266_v57 = vmul.f32 %v2947_v40, %v929_v49 }
 0x14f   : > { %v2084_v54 = vpack.c.bf16 %v1368_v46, %v1367_v43  ;;  %v2164_v55 = vpack.c.bf16 %v1400_v47, %v1399_v44  ;;  %v2324_v58 = vpop.f32.mrf.mxu0  ;;  %v2356_v59 = vpop.f32.mrf.mxu1  ;;  %v1307_v62 = vadd.f32 %v2951_v45, %v1236_v41  ;;  %v1339_v63 = vadd.f32 %v2951_v45, %v1268_v42 }
 0x150   : > { %v2079_v60 = vpack.c.bf16 %v1366_v52, %v1365_v50  ;;  %v2159_v61 = vpack.c.bf16 %v1398_v53, %v1397_v51  ;;  %v1237_v0 = vmul.f32 %v2324_v58, %v2947_v40  ;;  %v1269_v1 = vmul.f32 %v2356_v59, %v2947_v40 }
 0x151   : > { %2228 = vst [vmem:[%s2973_s23 + $0x18] sm:$0xff] %v2084_v54   ;;  %2244 = vst [vmem:[%s2973_s23 + $0x98] sm:$0xff] %v2164_v55   ;;  %v804_v2 = vpop.f32.mrf.mxu0  ;;  %v932_v3 = vpop.f32.mrf.mxu1  ;;  %v1305_v4 = vadd.f32 %v2951_v45, %v1234_v56  ;;  %v1337_v5 = vadd.f32 %v2951_v45, %v1266_v57  ;;  %v1371_v12 = vmax.f32 %v1307_v62, 0.0  ;;  %v1403_v13 = vmax.f32 %v1339_v63, 0.0 }
 0x152   : > { %2227 = vst [vmem:[%s2973_s23 + $0x10] sm:$0xff] %v2079_v60   ;;  %2243 = vst [vmem:[%s2973_s23 + $0x90] sm:$0xff] %v2159_v61   ;;  %v1235_v6 = vmul.f32 %v2947_v40, %v804_v2  ;;  %v1267_v7 = vmul.f32 %v2947_v40, %v932_v3  ;;  %v1308_v8 = vadd.f32 %v2951_v45, %v1237_v0 }
 0x153   : > { %v1340_v9 = vadd.f32 %v2951_v45, %v1269_v1  ;;  %v2327_v10 = vpop.f32.mrf.mxu0  ;;  %v2359_v11 = vpop.f32.mrf.mxu1  ;;  %v1369_v22 = vmax.f32 %v1305_v4, 0.0  ;;  %v1401_v23 = vmax.f32 %v1337_v5, 0.0 }
 0x154   : > { %v1306_v14 = vadd.f32 %v2951_v45, %v1235_v6  ;;  %v1338_v15 = vadd.f32 %v2951_v45, %v1267_v7  ;;  %v1372_v16 = vmax.f32 %v1308_v8, 0.0  ;;  %v1240_v18 = vmul.f32 %v2327_v10, %v2947_v40 }
 0x155   : > { %v1404_v17 = vmax.f32 %v1340_v9, 0.0  ;;  %v1272_v19 = vmul.f32 %v2359_v11, %v2947_v40  ;;  %v817_v20 = vpop.f32.mrf.mxu0  ;;  %v945_v21 = vpop.f32.mrf.mxu1 }
 0x156   : > { %v1370_v24 = vmax.f32 %v1306_v14, 0.0  ;;  %v1402_v25 = vmax.f32 %v1338_v15, 0.0  ;;  %v2094_v26 = vpack.c.bf16 %v1372_v16, %v1371_v12  ;;  %v1238_v28 = vmul.f32 %v2947_v40, %v817_v20 }
 0x157   : > { %v2174_v27 = vpack.c.bf16 %v1404_v17, %v1403_v13  ;;  %v1270_v29 = vmul.f32 %v2947_v40, %v945_v21  ;;  %v2328_v30 = vpop.f32.mrf.mxu0  ;;  %v2360_v31 = vpop.f32.mrf.mxu1  ;;  %v1311_v34 = vadd.f32 %v2951_v45, %v1240_v18  ;;  %v1343_v35 = vadd.f32 %v2951_v45, %v1272_v19 }
 0x158   : > { %v2089_v32 = vpack.c.bf16 %v1370_v24, %v1369_v22  ;;  %v2169_v33 = vpack.c.bf16 %v1402_v25, %v1401_v23  ;;  %2230 = vst [vmem:[%s2973_s23 + $0x28] sm:$0xff] %v2094_v26   ;;  %v1241_v36 = vmul.f32 %v2328_v30, %v2947_v40  ;;  %v1273_v37 = vmul.f32 %v2360_v31, %v2947_v40 }
 0x159   : > { %2246 = vst [vmem:[%s2973_s23 + $0xa8] sm:$0xff] %v2174_v27   ;;  %v820_v38 = vpop.f32.mrf.mxu0  ;;  %v948_v39 = vpop.f32.mrf.mxu1  ;;  %v1309_v41 = vadd.f32 %v2951_v45, %v1238_v28  ;;  %v1341_v42 = vadd.f32 %v2951_v45, %v1270_v29  ;;  %v1375_v54 = vmax.f32 %v1311_v34, 0.0  ;;  %v1407_v55 = vmax.f32 %v1343_v35, 0.0 }
 0x15a   : > { %2229 = vst [vmem:[%s2973_s23 + $0x20] sm:$0xff] %v2089_v32   ;;  %2245 = vst [vmem:[%s2973_s23 + $0xa0] sm:$0xff] %v2169_v33   ;;  %v1239_v43 = vmul.f32 %v2947_v40, %v820_v38  ;;  %v1271_v44 = vmul.f32 %v2947_v40, %v948_v39  ;;  %v1312_v46 = vadd.f32 %v2951_v45, %v1241_v36 }
 0x15b   : > { %v1344_v47 = vadd.f32 %v2951_v45, %v1273_v37  ;;  %v2331_v48 = vpop.f32.mrf.mxu0  ;;  %v2363_v49 = vpop.f32.mrf.mxu1  ;;  %v1373_v60 = vmax.f32 %v1309_v41, 0.0  ;;  %v1405_v61 = vmax.f32 %v1341_v42, 0.0 }
 0x15c   : > { %v1310_v50 = vadd.f32 %v2951_v45, %v1239_v43  ;;  %v1342_v51 = vadd.f32 %v2951_v45, %v1271_v44  ;;  %v1244_v52 = vmul.f32 %v2331_v48, %v2947_v40  ;;  %v1276_v53 = vmul.f32 %v2363_v49, %v2947_v40 }
 0x15d   : > { %v1376_v56 = vmax.f32 %v1312_v46, 0.0  ;;  %v1408_v57 = vmax.f32 %v1344_v47, 0.0  ;;  %v833_v58 = vpop.f32.mrf.mxu0  ;;  %v961_v59 = vpop.f32.mrf.mxu1 }
 0x15e   : > { %v1374_v62 = vmax.f32 %v1310_v50, 0.0  ;;  %v1406_v63 = vmax.f32 %v1342_v51, 0.0  ;;  %v1242_v2 = vmul.f32 %v2947_v40, %v833_v58  ;;  %v1274_v3 = vmul.f32 %v2947_v40, %v961_v59 }
 0x15f   : > { %v2104_v0 = vpack.c.bf16 %v1376_v56, %v1375_v54  ;;  %v2184_v1 = vpack.c.bf16 %v1408_v57, %v1407_v55  ;;  %v2332_v4 = vpop.f32.mrf.mxu0  ;;  %v2364_v5 = vpop.f32.mrf.mxu1  ;;  %v1315_v8 = vadd.f32 %v2951_v45, %v1244_v52  ;;  %v1347_v9 = vadd.f32 %v2951_v45, %v1276_v53 }
 0x160   : > { %v2099_v6 = vpack.c.bf16 %v1374_v62, %v1373_v60  ;;  %v2179_v7 = vpack.c.bf16 %v1406_v63, %v1405_v61  ;;  %v1245_v10 = vmul.f32 %v2332_v4, %v2947_v40  ;;  %v1277_v11 = vmul.f32 %v2364_v5, %v2947_v40 }
 0x161   : > { %2232 = vst [vmem:[%s2973_s23 + $0x38] sm:$0xff] %v2104_v0   ;;  %2248 = vst [vmem:[%s2973_s23 + $0xb8] sm:$0xff] %v2184_v1   ;;  %v836_v12 = vpop.f32.mrf.mxu0  ;;  %v964_v13 = vpop.f32.mrf.mxu1  ;;  %v1313_v14 = vadd.f32 %v2951_v45, %v1242_v2  ;;  %v1345_v15 = vadd.f32 %v2951_v45, %v1274_v3  ;;  %v1379_v22 = vmax.f32 %v1315_v8, 0.0  ;;  %v1411_v23 = vmax.f32 %v1347_v9, 0.0 }
 0x162   : > { %2231 = vst [vmem:[%s2973_s23 + $0x30] sm:$0xff] %v2099_v6   ;;  %2247 = vst [vmem:[%s2973_s23 + $0xb0] sm:$0xff] %v2179_v7   ;;  %v1243_v16 = vmul.f32 %v2947_v40, %v836_v12  ;;  %v1275_v17 = vmul.f32 %v2947_v40, %v964_v13  ;;  %v1316_v18 = vadd.f32 %v2951_v45, %v1245_v10 }
 0x163   : > { %v1348_v19 = vadd.f32 %v2951_v45, %v1277_v11  ;;  %v2335_v20 = vpop.f32.mrf.mxu0  ;;  %v2367_v21 = vpop.f32.mrf.mxu1  ;;  %v1377_v32 = vmax.f32 %v1313_v14, 0.0  ;;  %v1409_v33 = vmax.f32 %v1345_v15, 0.0 }
 0x164   : > { %v1314_v24 = vadd.f32 %v2951_v45, %v1243_v16  ;;  %v1346_v25 = vadd.f32 %v2951_v45, %v1275_v17  ;;  %v1380_v26 = vmax.f32 %v1316_v18, 0.0  ;;  %v1248_v28 = vmul.f32 %v2335_v20, %v2947_v40 }
 0x165   : > { %v1412_v27 = vmax.f32 %v1348_v19, 0.0  ;;  %v1280_v29 = vmul.f32 %v2367_v21, %v2947_v40  ;;  %v849_v30 = vpop.f32.mrf.mxu0  ;;  %v977_v31 = vpop.f32.mrf.mxu1 }
 0x166   : > { %v1378_v34 = vmax.f32 %v1314_v24, 0.0  ;;  %v1410_v35 = vmax.f32 %v1346_v25, 0.0  ;;  %v2114_v36 = vpack.c.bf16 %v1380_v26, %v1379_v22  ;;  %v1246_v38 = vmul.f32 %v2947_v40, %v849_v30 }
 0x167   : > { %v2194_v37 = vpack.c.bf16 %v1412_v27, %v1411_v23  ;;  %v1278_v39 = vmul.f32 %v2947_v40, %v977_v31  ;;  %v2336_v41 = vpop.f32.mrf.mxu0  ;;  %v2368_v42 = vpop.f32.mrf.mxu1  ;;  %v1319_v46 = vadd.f32 %v2951_v45, %v1248_v28  ;;  %v1351_v47 = vadd.f32 %v2951_v45, %v1280_v29 }
 0x168   : > { %v2109_v43 = vpack.c.bf16 %v1378_v34, %v1377_v32  ;;  %v2189_v44 = vpack.c.bf16 %v1410_v35, %v1409_v33  ;;  %2234 = vst [vmem:[%s2973_s23 + $0x48] sm:$0xff] %v2114_v36   ;;  %v1249_v48 = vmul.f32 %v2336_v41, %v2947_v40  ;;  %v1281_v49 = vmul.f32 %v2368_v42, %v2947_v40 }
 0x169   : > { %2250 = vst [vmem:[%s2973_s23 + $0xc8] sm:$0xff] %v2194_v37   ;;  %v852_v50 = vpop.f32.mrf.mxu0  ;;  %v980_v51 = vpop.f32.mrf.mxu1  ;;  %v1317_v52 = vadd.f32 %v2951_v45, %v1246_v38  ;;  %v1349_v53 = vadd.f32 %v2951_v45, %v1278_v39  ;;  %v1383_v0 = vmax.f32 %v1319_v46, 0.0  ;;  %v1415_v1 = vmax.f32 %v1351_v47, 0.0 }
 0x16a   : > { %2233 = vst [vmem:[%s2973_s23 + $0x40] sm:$0xff] %v2109_v43   ;;  %2249 = vst [vmem:[%s2973_s23 + $0xc0] sm:$0xff] %v2189_v44   ;;  %v1247_v54 = vmul.f32 %v2947_v40, %v852_v50  ;;  %v1279_v55 = vmul.f32 %v2947_v40, %v980_v51  ;;  %v1320_v56 = vadd.f32 %v2951_v45, %v1249_v48 }
 0x16b   : > { %v1352_v57 = vadd.f32 %v2951_v45, %v1281_v49  ;;  %v2339_v58 = vpop.f32.mrf.mxu0  ;;  %v2371_v59 = vpop.f32.mrf.mxu1  ;;  %v1381_v6 = vmax.f32 %v1317_v52, 0.0  ;;  %v1413_v7 = vmax.f32 %v1349_v53, 0.0 }
 0x16c   : > { %v1318_v60 = vadd.f32 %v2951_v45, %v1247_v54  ;;  %v1350_v61 = vadd.f32 %v2951_v45, %v1279_v55  ;;  %v1252_v62 = vmul.f32 %v2339_v58, %v2947_v40  ;;  %v1284_v63 = vmul.f32 %v2371_v59, %v2947_v40 }
 0x16d   : > { %v1384_v2 = vmax.f32 %v1320_v56, 0.0  ;;  %v1416_v3 = vmax.f32 %v1352_v57, 0.0  ;;  %v865_v4 = vpop.f32.mrf.mxu0  ;;  %v993_v5 = vpop.f32.mrf.mxu1 }
 0x16e   : > { %v1382_v8 = vmax.f32 %v1318_v60, 0.0  ;;  %v1414_v9 = vmax.f32 %v1350_v61, 0.0  ;;  %v1250_v12 = vmul.f32 %v2947_v40, %v865_v4  ;;  %v1282_v13 = vmul.f32 %v2947_v40, %v993_v5 }
 0x16f   : > { %v2124_v10 = vpack.c.bf16 %v1384_v2, %v1383_v0  ;;  %v2204_v11 = vpack.c.bf16 %v1416_v3, %v1415_v1  ;;  %v2340_v14 = vpop.f32.mrf.mxu0  ;;  %v2372_v15 = vpop.f32.mrf.mxu1  ;;  %v1323_v18 = vadd.f32 %v2951_v45, %v1252_v62  ;;  %v1355_v19 = vadd.f32 %v2951_v45, %v1284_v63 }
 0x170   : > { %v2119_v16 = vpack.c.bf16 %v1382_v8, %v1381_v6  ;;  %v2199_v17 = vpack.c.bf16 %v1414_v9, %v1413_v7  ;;  %v1253_v20 = vmul.f32 %v2340_v14, %v2947_v40  ;;  %v1285_v21 = vmul.f32 %v2372_v15, %v2947_v40 }
 0x171   : > { %2236 = vst [vmem:[%s2973_s23 + $0x58] sm:$0xff] %v2124_v10   ;;  %2252 = vst [vmem:[%s2973_s23 + $0xd8] sm:$0xff] %v2204_v11   ;;  %v868_v22 = vpop.f32.mrf.mxu0  ;;  %v996_v23 = vpop.f32.mrf.mxu1  ;;  %v1321_v24 = vadd.f32 %v2951_v45, %v1250_v12  ;;  %v1353_v25 = vadd.f32 %v2951_v45, %v1282_v13  ;;  %v1387_v32 = vmax.f32 %v1323_v18, 0.0  ;;  %v1419_v33 = vmax.f32 %v1355_v19, 0.0 }
 0x172   : > { %2235 = vst [vmem:[%s2973_s23 + $0x50] sm:$0xff] %v2119_v16   ;;  %2251 = vst [vmem:[%s2973_s23 + $0xd0] sm:$0xff] %v2199_v17   ;;  %v1251_v26 = vmul.f32 %v2947_v40, %v868_v22  ;;  %v1283_v27 = vmul.f32 %v2947_v40, %v996_v23  ;;  %v1324_v28 = vadd.f32 %v2951_v45, %v1253_v20 }
 0x173   : > { %v1356_v29 = vadd.f32 %v2951_v45, %v1285_v21  ;;  %v2343_v30 = vpop.f32.mrf.mxu0  ;;  %v2375_v31 = vpop.f32.mrf.mxu1  ;;  %v1385_v43 = vmax.f32 %v1321_v24, 0.0  ;;  %v1417_v44 = vmax.f32 %v1353_v25, 0.0 }
 0x174   : > { %v1322_v34 = vadd.f32 %v2951_v45, %v1251_v26  ;;  %v1354_v35 = vadd.f32 %v2951_v45, %v1283_v27  ;;  %v1388_v36 = vmax.f32 %v1324_v28, 0.0  ;;  %v1256_v38 = vmul.f32 %v2343_v30, %v2947_v40 }
 0x175   : > { %v1420_v37 = vmax.f32 %v1356_v29, 0.0  ;;  %v1288_v39 = vmul.f32 %v2375_v31, %v2947_v40  ;;  %v881_v41 = vpop.f32.mrf.mxu0  ;;  %v1009_v42 = vpop.f32.mrf.mxu1 }
 0x176   : > { %v1386_v46 = vmax.f32 %v1322_v34, 0.0  ;;  %v1418_v47 = vmax.f32 %v1354_v35, 0.0  ;;  %v2134_v48 = vpack.c.bf16 %v1388_v36, %v1387_v32  ;;  %v1254_v50 = vmul.f32 %v2947_v40, %v881_v41 }
 0x177   : > { %v2214_v49 = vpack.c.bf16 %v1420_v37, %v1419_v33  ;;  %v1286_v51 = vmul.f32 %v2947_v40, %v1009_v42  ;;  %v2344_v52 = vpop.f32.mrf.mxu0  ;;  %v2376_v53 = vpop.f32.mrf.mxu1  ;;  %v1327_v56 = vadd.f32 %v2951_v45, %v1256_v38  ;;  %v1359_v57 = vadd.f32 %v2951_v45, %v1288_v39 }
 0x178   : > { %v2129_v54 = vpack.c.bf16 %v1386_v46, %v1385_v43  ;;  %v2209_v55 = vpack.c.bf16 %v1418_v47, %v1417_v44  ;;  %2238 = vst [vmem:[%s2973_s23 + $0x68] sm:$0xff] %v2134_v48   ;;  %v1257_v58 = vmul.f32 %v2344_v52, %v2947_v40  ;;  %v1289_v59 = vmul.f32 %v2376_v53, %v2947_v40 }
 0x179   : > { %2254 = vst [vmem:[%s2973_s23 + $0xe8] sm:$0xff] %v2214_v49   ;;  %v884_v60 = vpop.f32.mrf.mxu0  ;;  %v1012_v61 = vpop.f32.mrf.mxu1  ;;  %v1325_v62 = vadd.f32 %v2951_v45, %v1254_v50  ;;  %v1357_v63 = vadd.f32 %v2951_v45, %v1286_v51  ;;  %v1391_v6 = vmax.f32 %v1327_v56, 0.0  ;;  %v1423_v7 = vmax.f32 %v1359_v57, 0.0 }
 0x17a   : > { %2237 = vst [vmem:[%s2973_s23 + $0x60] sm:$0xff] %v2129_v54   ;;  %2253 = vst [vmem:[%s2973_s23 + $0xe0] sm:$0xff] %v2209_v55   ;;  %v1255_v0 = vmul.f32 %v2947_v40, %v884_v60  ;;  %v1287_v1 = vmul.f32 %v2947_v40, %v1012_v61  ;;  %v1328_v2 = vadd.f32 %v2951_v45, %v1257_v58 }
 0x17b   : > { %v1360_v3 = vadd.f32 %v2951_v45, %v1289_v59  ;;  %v1389_v40 = vmax.f32 %v1325_v62, 0.0  ;;  %v1421_v10 = vmax.f32 %v1357_v63, 0.0 }
 0x17c   : > { %v1326_v4 = vadd.f32 %v2951_v45, %v1255_v0  ;;  %v1358_v5 = vadd.f32 %v2951_v45, %v1287_v1  ;;  %v1392_v8 = vmax.f32 %v1328_v2, 0.0 }
 0x17d   : > { %v1424_v9 = vmax.f32 %v1360_v3, 0.0 }
 0x17e   : > { %v1390_v11 = vmax.f32 %v1326_v4, 0.0  ;;  %v1422_v12 = vmax.f32 %v1358_v5, 0.0  ;;  %v2144_v13 = vpack.c.bf16 %v1392_v8, %v1391_v6 }
 0x17f   : > { %v2224_v14 = vpack.c.bf16 %v1424_v9, %v1423_v7 }
 0x180   : > { %v2139_v45 = vpack.c.bf16 %v1390_v11, %v1389_v40  ;;  %v2219_v15 = vpack.c.bf16 %v1422_v12, %v1421_v10  ;;  %2240 = vst [vmem:[%s2973_s23 + $0x78] sm:$0xff] %v2144_v13  }
 0x181   : > { %2256 = vst [vmem:[%s2973_s23 + $0xf8] sm:$0xff] %v2224_v14  }
 0x182   : > { %2239 = vst [vmem:[%s2973_s23 + $0x70] sm:$0xff] %v2139_v45   ;;  %2255 = vst [vmem:[%s2973_s23 + $0xf0] sm:$0xff] %v2219_v15  }
 0x183   : > { %2649 = shalt.err (!%p2646_p0)
}
 0x184   : > { %s2650_s8 = scalar_lea.hbm %s3116_s18, 4096  ;;  %s2654_s29 = scalar_lea.hbm %s3173_s4, 360448 }
 0x185   : > { %p2651_p3 = scmp.ne.s32.totalorder %s3116_s18, %s2650_s8  ;;  %p2655_p6 = scmp.lt.s32.totalorder %s3116_s18, %s3173_s4 }
 0x186   : > { %p2656_p5 = scmp.lt.s32.totalorder %s2654_s29, %s2650_s8 }
 0x187   : > { %p2652_p1 = pnand %p2651_p3, %p2862_p11 }
 0x188   : > { %p2657_p7 = por %p2656_p5, %p2655_p6 }
 0x189   : > { %p2653_p4 = pneg %p2652_p1 }
 0x18b   : > { %p2658_p8 = pnand %p2657_p7, %p2653_p4 }
 0x18d   : > { %2661 = shalt.err (!%p2658_p8)
}
 0x18e   : > { %s2733_s25 = smov 64   ;;  %s2734_s10 = smov 4  }
 0x18f   : > { %2407 = dma.vmem_to_hbm [thread:$0]  (%p2862_p11), %s3118_s27, 4096, %s3116_s18, %s1746_s7, %s2733_s25, %s2733_s25, %s2734_s10  }
 0x190 PF: > { %p2434_p9 = scmp.ge.s32.totalorder %s2724_s20, 2  ;;  %s1774_s24 = sand.u32 1, %s2704_s15  }
 0x191   : > { %p3191_p2 = scmp.ne.s32.totalorder %s3182_s26, 0  ;;  %s1775_s9 = scalar_lea.sflag [#allocation5], %s1774_s24 }
 0x193   : > { %p2424_p10 = pnand %p2434_p9, %p3191_p2 }
 0x195   : > { %p2425_p12 = pneg %p2424_p10 }
 0x197   : > { %2699 = dma.done.wait (%p2425_p12), %s1775_s9, 4096  }
 0x198   : > { %2701 = vsyncadd (%p2425_p12), %s1775_s9, 4294963200  ;;  %s22_s20 = sadd.s32 1, %s2724_s20   ;;  %s3192_s15 = smov %s2708_s16 }
 0x199   : > { %p19_p13 = scmp.ge.s32.totalorder %s22_s20, 90   ;;  %s3193_s16 = smov %s2712_s17 }
 0x19a   : > { %s3194_s17 = smov %s2874_s22  ;;  %s3195_s18 = smov %s2720_s19 }
 0x19b   : > { %s3196_s19 = smov %s3198_s12  ;;  %21 = sbr.rel (!%p19_p13) target bundleno = 8 (0x8), region = 102 }
 0x1a0   :  { %1780 = vsyncpa [#allocation4], 1 }
 0x1a1   :  { %1782 = vsyncpa [#allocation4 + $0x1], 1 }
 0x1a2   :  { %1783 = vsyncpa [#allocation7], 1 }
 0x1a3   :  { %1784 = vsyncpa [#allocation10], 1 }
 0x1a4   :  { %1785 = vsyncpa [#allocation5], 1 }
 0x1a5   :  { %1787 = vsyncpa [#allocation5 + $0x1], 1 }

</bundles_post_ra>
